<compile_context>
chip_gen: v6e
topology: v6e:2x2x1
jax: 0.10.0
libtpu: 0.0.40
codegen_flags: <defaults>
</compile_context>

<pallas_src>
import jax
import jax.numpy as jnp
from jax import lax
from jax.experimental import pallas as pl
from jax.experimental.pallas import tpu as pltpu


def _round_up(x, m):
    return (x + m - 1) // m * m


def mf_dot_kernel(pu_ref, qi_ref, out_ref):
    # (TB, F) tiles: elementwise product on the VPU, accumulate in f32.
    p = pu_ref[...].astype(jnp.float32)
    q = qi_ref[...].astype(jnp.float32)
    prod = p * q                                              # (TB, F)
    ones = jnp.ones((1, prod.shape[1]), jnp.float32)
    # (1, F) . (TB, F)^T -> (1, TB): reduction over factors rides the MXU and the
    # result is already lane-dense, so the store below is a full-width vst.
    out_ref[...] = lax.dot_general(
        ones, prod,
        dimension_numbers=(((1,), (1,)), ((), ())),
        preferred_element_type=jnp.float32,
    )


def mf_forward(user_id, item_id, P, Q, user_bias, item_bias,
               *, tb=512, vmem_budget_bytes=8 * 1024 * 1024):
    """Pallas-backed MF.forward.

    Embedding gathers stay in XLA; the per-row multiply-reduce hot path runs in the
    Pallas kernel on large, lane-aligned batch tiles with a lane-dense output.
    """
    B = int(user_id.shape[0])
    F = int(P.shape[1])
    out_dtype = P.dtype
    itemsize = jnp.dtype(P.dtype).itemsize

    # Batch tile: multiple of 128 (lane-dense output, satisfies the (8,128) sublane
    # rule), capped so 2 input streams x 2 pipeline buffers x (tb*F*itemsize) stays
    # well inside the default scoped-VMEM limit on every generation.
    budget_rows = max(128, vmem_budget_bytes // (4 * F * itemsize))
    max_tb = max(128, (budget_rows // 128) * 128)
    tb_eff = min(tb, max_tb, _round_up(B, 128))
    tb_eff = max(128, (tb_eff // 128) * 128)

    # Ragged batches: pad the id vectors (index 0 is always valid), slice the output.
    Bp = _round_up(B, tb_eff)
    if Bp != B:
        uid_p = jnp.pad(user_id, (0, Bp - B))
        iid_p = jnp.pad(item_id, (0, Bp - B))
    else:
        uid_p, iid_p = user_id, item_id

    # Gather factor rows in their native dtype (no f32 upcast of the big streams).
    P_u = jnp.take(P, uid_p, axis=0)    # (Bp, F)
    Q_i = jnp.take(Q, iid_p, axis=0)    # (Bp, F)

    grid = (Bp // tb_eff,)
    dots = pl.pallas_call(
        mf_dot_kernel,
        out_shape=jax.ShapeDtypeStruct((1, Bp), jnp.float32),
        grid_spec=pltpu.PrefetchScalarGridSpec(
            num_scalar_prefetch=0,
            grid=grid,
            in_specs=[
                pl.BlockSpec((tb_eff, F), lambda i: (i, 0)),   # P_u tile
                pl.BlockSpec((tb_eff, F), lambda i: (i, 0)),   # Q_i tile
            ],
            out_specs=pl.BlockSpec((1, tb_eff), lambda i: (0, i)),  # lane-dense row
        ),
        compiler_params=pltpu.CompilerParams(
            dimension_semantics=("parallel",)),
    )(P_u, Q_i)

    dots = dots.reshape(-1)[:B]                                # (B,)

    # Tiny bias gathers + adds stay in XLA (fused); matches b_u.squeeze()+b_i.squeeze().
    b_u = jnp.take(user_bias.reshape(-1), user_id, axis=0).astype(jnp.float32)
    b_i = jnp.take(item_bias.reshape(-1), item_id, axis=0).astype(jnp.float32)

    return (dots + b_u + b_i).astype(out_dtype)                # torch `.flatten()` -> (B,)


def _reference(user_id, item_id, P, Q, user_bias, item_bias):
    return ((P[user_id] * Q[item_id]).sum(axis=1)
            + user_bias[user_id, 0] + item_bias[item_id, 0])


if __name__ == "__main__":
    # Deterministic synthetic parameters (matches nn.init.normal_(std=0.01)).
    num_users, num_items, num_factors = 32, 48, 32
    batch = 8

    key = jax.random.PRNGKey(0)
    kP, kQ, kbu, kbi, ku, ki = jax.random.split(key, 6)

    P = 0.01 * jax.random.normal(kP, (num_users, num_factors), jnp.float32)
    Q = 0.01 * jax.random.normal(kQ, (num_items, num_factors), jnp.float32)
    user_bias = 0.01 * jax.random.normal(kbu, (num_users, 1), jnp.float32)
    item_bias = 0.01 * jax.random.normal(kbi, (num_items, 1), jnp.float32)

    user_id = jax.random.randint(ku, (batch,), 0, num_users, jnp.int32)
    item_id = jax.random.randint(ki, (batch,), 0, num_items, jnp.int32)

    out = jax.block_until_ready(
        mf_forward(user_id, item_id, P, Q, user_bias, item_bias))
    ref = _reference(user_id, item_id, P, Q, user_bias, item_bias)
    assert out.shape == (batch,)
    assert jnp.allclose(out, ref, atol=1e-5, rtol=1e-5)

    # Second check: ragged batch spanning several tiles (exercises padding + grid>1).
    batch2 = 300
    ku2, ki2 = jax.random.split(jax.random.PRNGKey(1), 2)
    uid2 = jax.random.randint(ku2, (batch2,), 0, num_users, jnp.int32)
    iid2 = jax.random.randint(ki2, (batch2,), 0, num_items, jnp.int32)
    out2 = jax.block_until_ready(
        mf_forward(uid2, iid2, P, Q, user_bias, item_bias, tb=128))
    ref2 = _reference(uid2, iid2, P, Q, user_bias, item_bias)
    assert out2.shape == (batch2,)
    assert jnp.allclose(out2, ref2, atol=1e-5, rtol=1e-5)

    print("KERNEL_OK")
</pallas_src>

<mosaic_0001>
module attributes {stable_mosaic.version = 11 : i64} {
  func.func @mf_dot_kernel(%arg0: i32, %arg1: memref<128x32xf32, #tpu.memory_space<vmem>>, %arg2: memref<128x32xf32, #tpu.memory_space<vmem>>, %arg3: memref<1x128xf32, #tpu.memory_space<vmem>>) attributes {dimension_semantics = [#tpu.dimension_semantics<parallel>], iteration_bounds = array<i64: 1>, scalar_prefetch = 0 : i64, scratch_operands = 0 : i64, tpu.core_type = #tpu.core_type<tc>, window_params = [{transform_indices = @transform_0, window_bounds = array<i64: 128, 32>}, {transform_indices = @transform_1, window_bounds = array<i64: 128, 32>}, {transform_indices = @transform_2, window_bounds = array<i64: 1, 128>}]} {
    %c0 = arith.constant 0 : index
    %c0_0 = arith.constant 0 : index
    %0 = vector.load %arg1[%c0, %c0_0] : memref<128x32xf32, #tpu.memory_space<vmem>>, vector<128x32xf32>
    %c0_1 = arith.constant 0 : index
    %c0_2 = arith.constant 0 : index
    %1 = vector.load %arg2[%c0_1, %c0_2] : memref<128x32xf32, #tpu.memory_space<vmem>>, vector<128x32xf32>
    %2 = arith.mulf %0, %1 : vector<128x32xf32>
    %cst = arith.constant 1.000000e+00 : f32
    %3 = vector.broadcast %cst : f32 to vector<1x32xf32>
    %cst_3 = arith.constant dense<0.000000e+00> : vector<1x128xf32>
    %4 = tpu.matmul %3, %2, %cst_3 {dimension_numbers = #tpu.dot_dimension_numbers<[1], [1], [0], [0], [0, 0, 1, 0], [], []>} : vector<1x32xf32>, vector<128x32xf32>, vector<1x128xf32> -> vector<1x128xf32>
    %c0_4 = arith.constant 0 : index
    %c0_5 = arith.constant 0 : index
    %5 = vector.load %arg3[%c0_4, %c0_5] : memref<1x128xf32, #tpu.memory_space<vmem>>, vector<1x128xf32>
    tpu.vector_store %arg3[%c0_4, %c0_5], %4 {strides = array<i32>} : memref<1x128xf32, #tpu.memory_space<vmem>>, vector<1x128xf32>,
    return
  }
  func.func @transform_0(%arg0: i32) -> (i32, i32) {
    %c0_i32 = arith.constant 0 : i32
    %c0_i32_0 = arith.constant 0 : i32
    return %arg0, %c0_i32 : i32, i32
  }
  func.func @transform_1(%arg0: i32) -> (i32, i32) {
    %c0_i32 = arith.constant 0 : i32
    %c0_i32_0 = arith.constant 0 : i32
    return %arg0, %c0_i32 : i32, i32
  }
  func.func @transform_2(%arg0: i32) -> (i32, i32) {
    %c0_i32 = arith.constant 0 : i32
    %c0_i32_0 = arith.constant 0 : i32
    return %c0_i32, %arg0 : i32, i32
  }
}

</mosaic_0001>

<bundles_post_ra>
// kernel: tpu_custom_call.1
= control target key start
LH: loop header
LB: loop body
LE: loop exit
PB: predicated region body
PF: predicated region fallthrough
CT: control target
= control target key end

     0   :  { %vm60_vm0 = vcmask 261120   ;;  %v292_v3 = vmov 0.0   ;;  %vm293_vm1 = vmmov 0   ;;  %s444_s0 = inlined_call_operand.vmem [shape: f32[128,32], index: 0, kind: input, shape index: {}]   ;;  %s445_s1 = inlined_call_operand.vmem [shape: f32[128,32], index: 1, kind: input, shape index: {}]   ;;  %s446_s2 = inlined_call_operand.hbm [shape: f32[1,128], index: 2, kind: output, shape index: {}]  }
   0x1   :  { %v27_v0 = vld [vmem:[%s444_s0 + $0x78] sm:$0xff]  ;;  %v26_v2 = vld [vmem:[%s444_s0 + $0x70] sm:$0xff]  ;;  %231 = vmatprep.subr.mxu0 %v292_v3  ;;  %263 = vmatprep.mubr.msk.f32.mxu0 %vm293_vm1, %v292_v3  ;;  %v25_v7 = vld [vmem:[%s444_s0 + $0x68] sm:$0xff] }
   0x2   :  { %v43_v1 = vld [vmem:[%s445_s1 + $0x78] sm:$0xff]  ;;  %v42_v5 = vld [vmem:[%s445_s1 + $0x70] sm:$0xff]  ;;  %v41_v8 = vld [vmem:[%s445_s1 + $0x68] sm:$0xff] }
   0x3   :  { %v59_v4 = vmul.f32 %v43_v1, %v27_v0  ;;  %v58_v6 = vmul.f32 %v42_v5, %v26_v2  ;;  %v57_v9 = vmul.f32 %v41_v8, %v25_v7  ;;  %v24_v10 = vld [vmem:[%s444_s0 + $0x60] sm:$0xff] }
   0x4   :  { %v40_v11 = vld [vmem:[%s445_s1 + $0x60] sm:$0xff] }
   0x5   :  { %232 = vmatpush3.xpose.msk.msra.mxu0 %vm60_vm0, %v59_v4 }
   0x6   :  { %233 = vmatprep.subr.mxu0 %v292_v3 }
   0x9   :  { %234 = vmatpush3.xpose.msk.msra.mxu0 %vm60_vm0, %v58_v6 }
   0xa   :  { %235 = vmatprep.subr.mxu0 %v292_v3 }
   0xb   :  { %7 = vsyncpa [#allocation3], 0  ;;  %v56_v12 = vmul.f32 %v40_v11, %v24_v10  ;;  %v23_v13 = vld [vmem:[%s444_s0 + $0x58] sm:$0xff]  ;;  %v22_v16 = vld [vmem:[%s444_s0 + $0x50] sm:$0xff]  ;;  %v294_v49 = vmov 1.0   ;;  %s295_s17 = smov [#allocation2]  }
   0xc   :  { %v39_v14 = vld [vmem:[%s445_s1 + $0x58] sm:$0xff]  ;;  %v38_v17 = vld [vmem:[%s445_s1 + $0x50] sm:$0xff]  ;;  %v21_v19 = vld [vmem:[%s444_s0 + $0x48] sm:$0xff]  ;;  %s189_s18 = sshll.u32 %s295_s17, 4  ;;  %s190_s18 = int_to_ptr.vmem [resolvable:$true] %s189_s18 }
   0xd   :  { %236 = vmatpush3.xpose.msk.msra.mxu0 %vm60_vm0, %v57_v9  ;;  %v55_v15 = vmul.f32 %v39_v14, %v23_v13  ;;  %v54_v18 = vmul.f32 %v38_v17, %v22_v16  ;;  %v37_v20 = vld [vmem:[%s445_s1 + $0x48] sm:$0xff]  ;;  %v20_v22 = vld [vmem:[%s444_s0 + $0x40] sm:$0xff]  ;;  %v19_v25 = vld [vmem:[%s444_s0 + $0x38] sm:$0xff]  ;;  %s274_s19 = scalar_lea.vmem %s190_s18, 32  ;;  %p275_p1 = scmp.lt.s32.totalorder %s190_s18, %s190_s18 }
   0xe   :  { %237 = vmatprep.subr.mxu0 %v292_v3  ;;  %v53_v21 = vmul.f32 %v37_v20, %v21_v19  ;;  %v36_v23 = vld [vmem:[%s445_s1 + $0x40] sm:$0xff]  ;;  %v35_v26 = vld [vmem:[%s445_s1 + $0x38] sm:$0xff]  ;;  %v18_v28 = vld [vmem:[%s444_s0 + $0x30] sm:$0xff] }
   0xf   :  { %v52_v24 = vmul.f32 %v36_v23, %v20_v22  ;;  %v51_v27 = vmul.f32 %v35_v26, %v19_v25  ;;  %v34_v29 = vld [vmem:[%s445_s1 + $0x30] sm:$0xff]  ;;  %v17_v31 = vld [vmem:[%s444_s0 + $0x28] sm:$0xff]  ;;  %v16_v34 = vld [vmem:[%s444_s0 + $0x20] sm:$0xff] }
  0x10   :  { %v50_v30 = vmul.f32 %v34_v29, %v18_v28  ;;  %v33_v32 = vld [vmem:[%s445_s1 + $0x28] sm:$0xff]  ;;  %v32_v35 = vld [vmem:[%s445_s1 + $0x20] sm:$0xff]  ;;  %v15_v37 = vld [vmem:[%s444_s0 + $0x18] sm:$0xff] }
  0x11   :  { %238 = vmatpush3.xpose.msk.msra.mxu0 %vm60_vm0, %v56_v12  ;;  %v49_v33 = vmul.f32 %v33_v32, %v17_v31  ;;  %v48_v36 = vmul.f32 %v32_v35, %v16_v34  ;;  %v31_v38 = vld [vmem:[%s445_s1 + $0x18] sm:$0xff]  ;;  %v14_v40 = vld [vmem:[%s444_s0 + $0x10] sm:$0xff]  ;;  %v13_v43 = vld [vmem:[%s444_s0 + $0x8] sm:$0xff] }
  0x12   :  { %239 = vmatprep.subr.mxu0 %v292_v3  ;;  %v47_v39 = vmul.f32 %v31_v38, %v15_v37  ;;  %v30_v41 = vld [vmem:[%s445_s1 + $0x10] sm:$0xff]  ;;  %v29_v44 = vld [vmem:[%s445_s1 + $0x8] sm:$0xff]  ;;  %v12_v46 = vld [vmem:[%s444_s0] sm:$0xff]  ;;  %s270_s0 = scalar_lea.vmem %s190_s18, 16 }
  0x13   :  { %v46_v42 = vmul.f32 %v30_v41, %v14_v40  ;;  %v45_v45 = vmul.f32 %v29_v44, %v13_v43  ;;  %v28_v47 = vld [vmem:[%s445_s1] sm:$0xff]  ;;  %p271_p0 = scmp.ne.s32.totalorder %s190_s18, %s270_s0  ;;  %p276_p2 = scmp.lt.s32.totalorder %s274_s19, %s270_s0 }
  0x14   :  { %v44_v48 = vmul.f32 %v28_v47, %v12_v46 }
  0x15   :  { %240 = vmatpush3.xpose.msk.msra.mxu0 %vm60_vm0, %v55_v15  ;;  %p277_p3 = por %p276_p2, %p275_p1 }
  0x16   :  { %241 = vmatprep.subr.mxu0 %v292_v3 }
  0x17   :  { %p278_p4 = pnand %p277_p3, %p271_p0 }
  0x19   :  { %242 = vmatpush3.xpose.msk.msra.mxu0 %vm60_vm0, %v54_v18 }
  0x1a   :  { %243 = vmatprep.subr.mxu0 %v292_v3 }
  0x1d   :  { %244 = vmatpush3.xpose.msk.msra.mxu0 %vm60_vm0, %v53_v21 }
  0x1e   :  { %245 = vmatprep.subr.mxu0 %v292_v3 }
  0x21   :  { %246 = vmatpush3.xpose.msk.msra.mxu0 %vm60_vm0, %v52_v24 }
  0x22   :  { %247 = vmatprep.subr.mxu0 %v292_v3 }
  0x25   :  { %248 = vmatpush3.xpose.msk.msra.mxu0 %vm60_vm0, %v51_v27 }
  0x26   :  { %249 = vmatprep.subr.mxu0 %v292_v3 }
  0x29   :  { %250 = vmatpush3.xpose.msk.msra.mxu0 %vm60_vm0, %v50_v30 }
  0x2a   :  { %251 = vmatprep.subr.mxu0 %v292_v3 }
  0x2d   :  { %252 = vmatpush3.xpose.msk.msra.mxu0 %vm60_vm0, %v49_v33 }
  0x2e   :  { %253 = vmatprep.subr.mxu0 %v292_v3 }
  0x31   :  { %254 = vmatpush3.xpose.msk.msra.mxu0 %vm60_vm0, %v48_v36 }
  0x32   :  { %255 = vmatprep.subr.mxu0 %v292_v3 }
  0x35   :  { %256 = vmatpush3.xpose.msk.msra.mxu0 %vm60_vm0, %v47_v39 }
  0x36   :  { %257 = vmatprep.subr.mxu0 %v292_v3 }
  0x39   :  { %258 = vmatpush3.xpose.msk.msra.mxu0 %vm60_vm0, %v46_v42 }
  0x3a   :  { %259 = vmatprep.subr.mxu0 %v292_v3 }
  0x3d   :  { %260 = vmatpush3.xpose.msk.msra.mxu0 %vm60_vm0, %v45_v45 }
  0x3e   :  { %261 = vmatprep.subr.mxu0 %v292_v3 }
  0x41   :  { %262 = vmatpush3.xpose.msk.msra.mxu0 %vm60_vm0, %v44_v48 }
  0x44   :  { %264 = vmatmul.mubr.msk.f32.vlgmr.msra.gmra.mxu0 %vm60_vm0, %v294_v49 }
 0x104   :  { %v178_v50 = vpop.f32.mrf.mxu0 }
 0x105   :  { %182 = vst [vmem:[#allocation2] sm:$0x1] %v178_v50 }
 0x106   :  { %v265_v51 = vpop.f32.mrf.mxu0 }
 0x107   :  { %281 = shalt.err (!%p278_p4)
}
 0x108   :  { %192 = dma.vmem_to_hbm [thread:$0]  %s190_s18, 16, %s446_s2, [#allocation3]  }
 0x109   :  { %290 = dma.done.wait [#allocation3], 16  }
 0x10a   :  { %291 = vsyncadd [#allocation3], 4294967280 }
 0x10b   :  { %196 = vsyncpa [#allocation3], 1 }

</bundles_post_ra>
